<compile_context>
chip_gen: v7x
topology: tpu7x:2x2x1
jax: 0.10.0
libtpu: 0.0.40
codegen_flags: <defaults>
</compile_context>

<pallas_src>
import jax
import jax.numpy as jnp
from jax.experimental import pallas as pl
from jax.experimental.pallas import tpu as pltpu


def _round_up(x, m):
    return (x + m - 1) // m * m


def _detect_generation():
    """Best-effort TPU generation detection for tile sizing."""
    try:
        kind = jax.devices()[0].device_kind.lower()
    except Exception:  # pragma: no cover - CPU/interpret fallbacks
        return "unknown"
    if "v5" in kind:
        return "v5e"
    if "v6" in kind:
        return "v6e"
    if "v7" in kind or "7x" in kind:
        return "v7x"
    return "unknown"


def _gen_tile_caps(gen):
    """(tm_max, tn_max, tk_max, vmem_limit_bytes) per TPU generation."""
    if gen == "v6e":
        # Highest compute:bandwidth ratio -> big tiles; needs > 32 MiB scoped
        # VMEM but well under the 128 MiB physical budget.
        return 1024, 2048, 1024, 64 << 20
    if gen == "v7x":
        # 64 MiB physical / 32 MiB scoped default: moderate tiles that still
        # clear the per-TC HBM/MXU break-even (~311 FLOP/byte).
        return 512, 1024, 1024, None
    if gen == "v5e":
        # ~240 FLOP/byte break-even, 16 MiB default scoped VMEM.
        return 512, 512, 512, None
    # Unknown chip: conservative middle ground.
    return 512, 1024, 1024, None


def _pick_tile(dim, max_tile, align):
    """Largest tile (multiple of `align`, <= max_tile) with bounded padding.

    If the full (aligned) dim fits, use a single tile.  Otherwise accept the
    largest tile whose padding beyond the unavoidable alignment padding stays
    within ~10% of `dim` (avoids e.g. B=528 -> Bp=1024 2x waste).
    """
    full = _round_up(dim, align)
    if full <= max_tile:
        return full
    t = (max_tile // align) * align
    while t > align:
        extra = _round_up(dim, t) - full
        if extra <= 0.1 * dim:
            return t
        t -= align
    return align


# ---------------------------------------------------------------------------
# Kernels.  Plain [M,K] @ [K,N] contraction on bf16 MXU operands.
# ---------------------------------------------------------------------------

def _dp_linear_kernel_f32out(x_ref, w_ref, b_ref, o_ref):
    """f32 output: accumulate directly into the resident output block."""
    k = pl.program_id(2)

    @pl.when(k == 0)
    def _():
        # Init with the (replicated) bias -> no finalize step needed.
        o_ref[...] = jnp.broadcast_to(b_ref[...], o_ref.shape)

    o_ref[...] += jnp.dot(x_ref[...], w_ref[...],
                          preferred_element_type=jnp.float32)


def _dp_linear_kernel_lowp(x_ref, w_ref, b_ref, o_ref, acc_ref):
    """Low-precision output: f32 VMEM accumulator, single cast at the end."""
    k = pl.program_id(2)

    @pl.when(k == 0)
    def _():
        acc_ref[...] = jnp.broadcast_to(b_ref[...], acc_ref.shape)

    acc_ref[...] += jnp.dot(x_ref[...], w_ref[...],
                            preferred_element_type=jnp.float32)

    @pl.when(k == pl.num_programs(2) - 1)
    def _():
        o_ref[...] = acc_ref[...].astype(o_ref.dtype)


# ---------------------------------------------------------------------------
# Wrapper: DataParallelFuture(Linear) forward.
# ---------------------------------------------------------------------------

class DataParallelFutureLinear:
    """Pallas-TPU equivalent of DataParallelFuture(nn.Linear(d_in, d_out)).

    Static parameter prep (transpose to [D_in, D_out], pad to tile multiples,
    bf16 cast) is done ONCE here; only the activations are padded/cast per
    call.  `num_devices` is kept for API parity with the PyTorch module — the
    scatter->run->gather result is device-count invariant, so the TPU tiling
    is chosen for the hardware instead of the device list.
    """

    def __init__(self, weight, bias, num_devices=1, compute_dtype=jnp.bfloat16):
        assert num_devices >= 1
        weight = jnp.asarray(weight)
        bias = jnp.asarray(bias)
        self.d_out, self.d_in = weight.shape
        assert bias.shape == (self.d_out,)
        self.num_devices = num_devices
        self.compute_dtype = compute_dtype

        self.gen = _detect_generation()
        self.tm_max, tn_max, tk_max, self.vmem_limit = _gen_tile_caps(self.gen)

        # N / K tiles depend only on the (static) layer shape.
        self.tn = _pick_tile(self.d_out, tn_max, 128)
        self.tk = _pick_tile(self.d_in, tk_max, 128)
        self.Np = _round_up(self.d_out, self.tn)
        self.Kp = _round_up(self.d_in, self.tk)

        # One-time weight prep (hoisted out of the per-call path):
        # transpose to [D_in, D_out] for a plain [M,K]@[K,N] contraction,
        # zero-pad (exact for matmul + bias), cast MXU operand to bf16.
        w_t = weight.T  # [D_in, D_out]
        self.w_p = jnp.pad(
            w_t, ((0, self.Kp - self.d_in), (0, self.Np - self.d_out))
        ).astype(compute_dtype)
        self.b_p = jnp.pad(
            bias.astype(jnp.float32).reshape(1, self.d_out),
            ((0, 0), (0, self.Np - self.d_out)),
        )

    def __call__(self, x):
        B, d_in = x.shape
        assert d_in == self.d_in
        out_dtype = x.dtype

        tm = _pick_tile(B, self.tm_max, 16)
        tn, tk = self.tn, self.tk
        Bp = _round_up(B, tm)
        Np, Kp = self.Np, self.Kp

        # v7x has 2 TensorCores: make sure the two "parallel" grid axes expose
        # at least 2 tiles so neither core sits idle.
        if self.gen == "v7x" and (Bp // tm) * (Np // tn) < 2:
            if tn % 256 == 0:
                tn //= 2
            elif tm % 32 == 0:
                tm //= 2
                Bp = _round_up(B, tm)

        # Per-call activation prep only (weights already prepped).
        x_p = x
        if (Bp, Kp) != (B, d_in):
            x_p = jnp.pad(x, ((0, Bp - B), (0, Kp - d_in)))
        x_p = x_p.astype(self.compute_dtype)

        grid = (Bp // tm, Np // tn, Kp // tk)
        grid_m, grid_n, grid_k = grid

        f32_out = jnp.dtype(out_dtype) == jnp.dtype(jnp.float32)
        if f32_out:
            kernel = _dp_linear_kernel_f32out
            scratch_shapes = []
        else:
            kernel = _dp_linear_kernel_lowp
            scratch_shapes = [pltpu.VMEM((tm, tn), jnp.float32)]

        grid_spec = pltpu.PrefetchScalarGridSpec(
            num_scalar_prefetch=0,
            grid=grid,
            in_specs=[
                # Scattered batch tile.
                # TODO(synk): add pipeline_mode=pl.Buffered(3) here only if an
                # xprof/bundle dump shows an exposed refetch bubble at j-tile
                # boundaries once the kernel is compute-bound.
                pl.BlockSpec((tm, tk), lambda i, j, k: (i, k)),
                # Replicated weight tile, [K, N] layout (pre-transposed once).
                pl.BlockSpec((tk, tn), lambda i, j, k: (k, j)),
                # Replicated bias tile (N-keyed).
                pl.BlockSpec((1, tn), lambda i, j, k: (0, j)),
            ],
            out_specs=pl.BlockSpec((tm, tn), lambda i, j, k: (i, j)),
            scratch_shapes=scratch_shapes,
        )

        c_item = jnp.dtype(self.compute_dtype).itemsize
        o_item = jnp.dtype(out_dtype).itemsize
        # Honest traffic estimate under this grid: x is streamed once per N
        # tile, weight once per M tile, bias per (i,j), output written once.
        bytes_accessed = (
            Bp * Kp * c_item * grid_n
            + Kp * Np * c_item * grid_m
            + Np * 4 * grid_m * grid_n
            + Bp * Np * o_item
        )
        cost = pl.CostEstimate(flops=2 * Bp * Kp * Np, transcendentals=0,
                               bytes_accessed=bytes_accessed)

        out_p = pl.pallas_call(
            kernel,
            out_shape=jax.ShapeDtypeStruct((Bp, Np), out_dtype),
            grid_spec=grid_spec,
            compiler_params=pltpu.CompilerParams(
                dimension_semantics=("parallel", "parallel", "arbitrary"),
                vmem_limit_bytes=self.vmem_limit,
            ),
            cost_estimate=cost,
        )(x_p, self.w_p, self.b_p)

        return out_p[:B, :self.d_out]


def data_parallel_future_linear(x, weight, bias, num_devices=1,
                                compute_dtype=jnp.bfloat16):
    """One-shot convenience wrapper (does the static weight prep inline)."""
    return DataParallelFutureLinear(
        weight, bias, num_devices=num_devices, compute_dtype=compute_dtype
    )(x)


if __name__ == "__main__":
    # TODO(synk): the CUDA-availability check and ThreadPoolExecutor/device
    # scatter-replicate plumbing have no Pallas equivalent; the tiled grid
    # reproduces the scatter -> replicated module -> gather dataflow.
    key = jax.random.PRNGKey(0)
    kx, kw, kb = jax.random.split(key, 3)

    B, D_in, D_out = 16, 32, 32
    num_devices = 2  # API parity only; does not affect the gathered result.

    x = jax.random.normal(kx, (B, D_in), dtype=jnp.float32)
    weight = jax.random.normal(kw, (D_out, D_in), dtype=jnp.float32) * 0.1
    bias = jax.random.normal(kb, (D_out,), dtype=jnp.float32) * 0.1

    # Build the module once (weight transpose/pad/cast hoisted out of calls).
    module = DataParallelFutureLinear(weight, bias, num_devices=num_devices)

    # --- f32 output path (direct accumulation into the output block) -------
    out = module(x)
    out = jax.block_until_ready(out)
    assert out.shape == (B, D_out)
    assert out.dtype == x.dtype

    xb = x.astype(jnp.bfloat16).astype(jnp.float32)
    wb = weight.astype(jnp.bfloat16).astype(jnp.float32)
    ref_bf16 = xb @ wb.T + bias
    assert jnp.allclose(out, ref_bf16, atol=1e-3, rtol=1e-3)

    ref_f32 = x @ weight.T + bias
    assert jnp.allclose(out, ref_f32, atol=3e-2, rtol=3e-2)

    # --- bf16 output path (f32 VMEM accumulator + single cast) -------------
    x_bf16 = x.astype(jnp.bfloat16)
    out_bf16 = jax.block_until_ready(module(x_bf16))
    assert out_bf16.shape == (B, D_out)
    assert out_bf16.dtype == jnp.bfloat16
    ref_lowp = (xb @ wb.T + bias).astype(jnp.bfloat16).astype(jnp.float32)
    assert jnp.allclose(out_bf16.astype(jnp.float32), ref_lowp,
                        atol=2e-2, rtol=2e-2)

    print("KERNEL_OK")
</pallas_src>

<mosaic_0001>
module attributes {stable_mosaic.version = 11 : i64} {
  func.func @_dp_linear_kernel_f32out(%arg0: i32, %arg1: i32, %arg2: i32, %arg3: memref<16x128xbf16, #tpu.memory_space<vmem>>, %arg4: memref<128x128xbf16, #tpu.memory_space<vmem>>, %arg5: memref<1x128xf32, #tpu.memory_space<vmem>>, %arg6: memref<16x128xf32, #tpu.memory_space<vmem>>) attributes {dimension_semantics = [#tpu.dimension_semantics<parallel>, #tpu.dimension_semantics<parallel>, #tpu.dimension_semantics<arbitrary>], iteration_bounds = array<i64: 1, 1, 1>, scalar_prefetch = 0 : i64, scratch_operands = 0 : i64, tpu.core_type = #tpu.core_type<tc>, window_params = [{transform_indices = @transform_0, window_bounds = array<i64: 16, 128>}, {transform_indices = @transform_1, window_bounds = array<i64: 128, 128>}, {transform_indices = @transform_2, window_bounds = array<i64: 1, 128>}, {transform_indices = @transform_3, window_bounds = array<i64: 16, 128>}]} {
    %c0_i32 = arith.constant 0 : i32
    %0 = arith.cmpi eq, %arg2, %c0_i32 : i32
    %1 = arith.extui %0 : i1 to i32
    %c0_i32_0 = arith.constant 0 : i32
    %2 = arith.cmpi ne, %1, %c0_i32_0 : i32
    scf.if %2 {
      %c0_8 = arith.constant 0 : index
      %c0_9 = arith.constant 0 : index
      %9 = vector.load %arg5[%c0_8, %c0_9] : memref<1x128xf32, #tpu.memory_space<vmem>>, vector<1x128xf32>
      %10 = vector.shape_cast %9 : vector<1x128xf32> to vector<1x128xf32>
      %11 = vector.broadcast %10 : vector<1x128xf32> to vector<16x128xf32>
      %c0_10 = arith.constant 0 : index
      %c0_11 = arith.constant 0 : index
      %12 = vector.load %arg6[%c0_10, %c0_11] : memref<16x128xf32, #tpu.memory_space<vmem>>, vector<16x128xf32>
      tpu.vector_store %arg6[%c0_10, %c0_11], %11 {strides = array<i32>} : memref<16x128xf32, #tpu.memory_space<vmem>>, vector<16x128xf32>,
    } else {
    }
    %c0 = arith.constant 0 : index
    %c0_1 = arith.constant 0 : index
    %3 = vector.load %arg6[%c0, %c0_1] : memref<16x128xf32, #tpu.memory_space<vmem>>, vector<16x128xf32>
    %c0_2 = arith.constant 0 : index
    %c0_3 = arith.constant 0 : index
    %4 = vector.load %arg3[%c0_2, %c0_3] : memref<16x128xbf16, #tpu.memory_space<vmem>>, vector<16x128xbf16>
    %c0_4 = arith.constant 0 : index
    %c0_5 = arith.constant 0 : index
    %5 = vector.load %arg4[%c0_4, %c0_5] : memref<128x128xbf16, #tpu.memory_space<vmem>>, vector<128x128xbf16>
    %cst = arith.constant dense<0.000000e+00> : vector<16x128xf32>
    %6 = tpu.matmul %4, %5, %cst {dimension_numbers = #tpu.dot_dimension_numbers<[1], [0], [0], [1], [0, 0, 1, 1], [], []>} : vector<16x128xbf16>, vector<128x128xbf16>, vector<16x128xf32> -> vector<16x128xf32>
    %7 = arith.addf %3, %6 : vector<16x128xf32>
    %c0_6 = arith.constant 0 : index
    %c0_7 = arith.constant 0 : index
    %8 = vector.load %arg6[%c0_6, %c0_7] : memref<16x128xf32, #tpu.memory_space<vmem>>, vector<16x128xf32>
    tpu.vector_store %arg6[%c0_6, %c0_7], %7 {strides = array<i32>} : memref<16x128xf32, #tpu.memory_space<vmem>>, vector<16x128xf32>,
    return
  }
  func.func @transform_0(%arg0: i32, %arg1: i32, %arg2: i32) -> (i32, i32) {
    %c0_i32 = arith.constant 0 : i32
    return %arg0, %arg2 : i32, i32
  }
  func.func @transform_1(%arg0: i32, %arg1: i32, %arg2: i32) -> (i32, i32) {
    %c0_i32 = arith.constant 0 : i32
    return %arg2, %arg1 : i32, i32
  }
  func.func @transform_2(%arg0: i32, %arg1: i32, %arg2: i32) -> (i32, i32) {
    %c0_i32 = arith.constant 0 : i32
    %c0_i32_0 = arith.constant 0 : i32
    return %c0_i32, %arg1 : i32, i32
  }
  func.func @transform_3(%arg0: i32, %arg1: i32, %arg2: i32) -> (i32, i32) {
    %c0_i32 = arith.constant 0 : i32
    return %arg0, %arg1 : i32, i32
  }
}

</mosaic_0001>

<bundles_post_ra>
// kernel: tpu_custom_call.1
= control target key start
LH: loop header
LB: loop body
LE: loop exit
PB: predicated region body
PF: predicated region fallthrough
CT: control target
= control target key end

     0   :  { %8 = vsyncpa [#allocation3], 0  ;;  %s391_s0 = inlined_call_operand.hbm [shape: bf16[16,128], index: 0, kind: input, shape index: {}]   ;;  %s392_s1 = inlined_call_operand.hbm [shape: bf16[128,128], index: 1, kind: input, shape index: {}]   ;;  %s393_s2 = inlined_call_operand.vmem [shape: f32[1,128], index: 2, kind: input, shape index: {}]   ;;  %s394_s3 = inlined_call_operand.hbm [shape: f32[16,128], index: 3, kind: output, shape index: {}]  }
   0x1   :  { %9 = vsyncpa [#allocation6], 0 }
   0x2   :  { %10 = vsyncpa [#allocation4], 0  ;;  %s323_s12 = smov [#allocation2]   ;;  %s251_s16 = scalar_lea.hbm %s391_s0, 128 }
   0x3   :  { %s16_s13 = sshll.u32 %s323_s12, 4  ;;  %p252_p0 = scmp.ne.s32.totalorder %s391_s0, %s251_s16  ;;  %s17_s13 = int_to_ptr.vmem [resolvable:$true] %s16_s13 }
   0x4   :  { %p255_p1 = scmp.lt.u32.totalorder %s251_s16, %s391_s0 }
   0x6   :  { %p257_p2 = pnand %p255_p1, %p252_p0 }
   0x8   :  { %260 = shalt.err (!%p257_p2)
}
   0x9   :  { %s261_s21 = scalar_lea.vmem %s17_s13, 128  ;;  %p266_p4 = scmp.lt.s32.totalorder %s17_s13, %s17_s13 }
   0xa   :  { %p262_p3 = scmp.ne.s32.totalorder %s17_s13, %s261_s21  ;;  %p267_p5 = scmp.lt.s32.totalorder %s261_s21, %s261_s21 }
   0xc   :  { %p268_p6 = por %p267_p5, %p266_p4 }
   0xe   :  { %p269_p7 = pnand %p268_p6, %p262_p3 }
  0x10   :  { %272 = shalt.err (!%p269_p7)
}
  0x11   :  { %s324_s22 = smov 64   ;;  %s325_s23 = smov 4  }
  0x12   :  { %22 = dma.hbm_to_vmem [thread:$0]  %s391_s0, 128, %s17_s13, [#allocation3], %s324_s22, %s324_s22, %s325_s23  }
  0x13   :  { %s326_s26 = smov [#allocation5]   ;;  %s273_s30 = scalar_lea.hbm %s392_s1, 1024 }
  0x14   :  { %s28_s27 = sshll.u32 %s326_s26, 4  ;;  %p274_p8 = scmp.ne.s32.totalorder %s392_s1, %s273_s30  ;;  %s29_s27 = int_to_ptr.vmem [resolvable:$true] %s28_s27 }
  0x15   :  { %p277_p9 = scmp.lt.u32.totalorder %s273_s30, %s392_s1 }
  0x17   :  { %p279_p10 = pnand %p277_p9, %p274_p8 }
  0x19   :  { %282 = shalt.err (!%p279_p10)
}
  0x1a   :  { %s283_s8 = scalar_lea.vmem %s29_s27, 1024  ;;  %p288_p12 = scmp.lt.s32.totalorder %s29_s27, %s29_s27 }
  0x1b   :  { %p284_p11 = scmp.ne.s32.totalorder %s29_s27, %s283_s8  ;;  %p289_p13 = scmp.lt.s32.totalorder %s283_s8, %s283_s8 }
  0x1d   :  { %p290_p0 = por %p289_p13, %p288_p12 }
  0x1f   :  { %p291_p1 = pnand %p290_p0, %p284_p11 }
  0x21   :  { %294 = shalt.err (!%p291_p1)
}
  0x22   :  { %34 = dma.hbm_to_vmem [thread:$0]  %s392_s1, 1024, %s29_s27, [#allocation6], %s324_s22, %s324_s22, %s325_s23  }
  0x23   :  { %317 = dma.done.wait [#allocation3], 128  }
  0x24   :  { %318 = vsyncadd [#allocation3], 4294967168 }
  0x25   :  { %319 = dma.done.wait [#allocation6], 1024  }
  0x26   :  { %320 = vsyncadd [#allocation6], 4294966272  ;;  %v327_v0 = vmov 0.0   ;;  %vm328_vm0 = vmmov 0   ;;  %v242_v1 = vld [vmem:[#allocation5] sm:$0xff]   ;;  %v243_v2 = vld [vmem:[#allocation5 + $0x8] sm:$0xff]  }
  0x27   :  { %213 = vmatprep.subr.bf16.mxu0 %v327_v0  ;;  %229 = vmatprep.mubr.msk.bf16.mxu0 %vm328_vm0, %v327_v0  ;;  %v244_v3 = vld [vmem:[#allocation5 + $0x10] sm:$0xff]   ;;  %v245_v4 = vld [vmem:[#allocation5 + $0x18] sm:$0xff]   ;;  %v246_v5 = vld [vmem:[#allocation5 + $0x20] sm:$0xff]   ;;  %s329_s11 = smov [#allocation7]  }
  0x28   :  { %214 = vmatpush3.bf16.msra.mxu0 %v242_v1  ;;  %v247_v6 = vld [vmem:[#allocation5 + $0x28] sm:$0xff]   ;;  %v248_v7 = vld [vmem:[#allocation5 + $0x30] sm:$0xff]   ;;  %v249_v8 = vld [vmem:[#allocation5 + $0x38] sm:$0xff]   ;;  %s181_s12 = sshll.u32 %s329_s11, 4  ;;  %s182_s12 = int_to_ptr.vmem [resolvable:$true] %s181_s12 }
  0x29   :  { %215 = vmatprep.subr.bf16.mxu0 %v327_v0  ;;  %v250_v9 = vld [vmem:[#allocation2] sm:$0xff]   ;;  %s295_s13 = scalar_lea.vmem %s182_s12, 256  ;;  %p300_p3 = scmp.lt.s32.totalorder %s182_s12, %s182_s12 }
  0x2a   :  { %v194_v10 = vld [vmem:[%s393_s2] ss:$0 sm:$0xff]  ;;  %p296_p2 = scmp.ne.s32.totalorder %s182_s12, %s295_s13  ;;  %p301_p4 = scmp.lt.s32.totalorder %s295_s13, %s295_s13 }
  0x2c   :  { %216 = vmatpush3.bf16.msra.mxu0 %v243_v2  ;;  %p302_p5 = por %p301_p4, %p300_p3 }
  0x2d   :  { %217 = vmatprep.subr.bf16.mxu0 %v327_v0 }
  0x2e   :  { %p303_p6 = pnand %p302_p5, %p296_p2 }
  0x30   :  { %218 = vmatpush3.bf16.msra.mxu0 %v244_v3 }
  0x31   :  { %219 = vmatprep.subr.bf16.mxu0 %v327_v0 }
  0x34   :  { %220 = vmatpush3.bf16.msra.mxu0 %v245_v4 }
  0x35   :  { %221 = vmatprep.subr.bf16.mxu0 %v327_v0 }
  0x38   :  { %222 = vmatpush3.bf16.msra.mxu0 %v246_v5 }
  0x39   :  { %223 = vmatprep.subr.bf16.mxu0 %v327_v0 }
  0x3c   :  { %224 = vmatpush3.bf16.msra.mxu0 %v247_v6 }
  0x3d   :  { %225 = vmatprep.subr.bf16.mxu0 %v327_v0 }
  0x40   :  { %226 = vmatpush3.bf16.msra.mxu0 %v248_v7 }
  0x41   :  { %227 = vmatprep.subr.bf16.mxu0 %v327_v0 }
  0x44   :  { %228 = vmatpush3.bf16.msra.mxu0 %v249_v8 }
  0x47   :  { %230 = vmatmul.mubr.bf16.vlgmr.msra.gmra.mrb[0].mxu0 %v250_v9 }
 0x11a   :  { %v165_v11 = vpop.f32.mrb[0].mxu0 }
 0x11b   :  { %v172_v12 = vadd.f32 %v194_v10, %v165_v11  ;;  %v231_v13 = vpop.f32.mrb[1].mxu0 }
 0x11c   :  { %v168_v14 = vpop.f32.mrb[2].mxu0 }
 0x11d   :  { %174 = vst [vmem:[#allocation7] sm:$0xff] %v172_v12  ;;  %v173_v15 = vadd.f32 %v194_v10, %v168_v14  ;;  %v232_v16 = vpop.f32.mrb[3].mxu0 }
 0x11f   :  { %175 = vst [vmem:[#allocation7 + $0x8] sm:$0xff] %v173_v15 }
 0x120   :  { %306 = shalt.err (!%p303_p6)
}
 0x121   :  { %s307_s15 = scalar_lea.hbm %s394_s3, 256 }
 0x122   :  { %p308_p7 = scmp.ne.s32.totalorder %s394_s3, %s307_s15  ;;  %p311_p8 = scmp.lt.u32.totalorder %s307_s15, %s394_s3 }
 0x124   :  { %p313_p9 = pnand %p311_p8, %p308_p7 }
 0x126   :  { %316 = shalt.err (!%p313_p9)
}
 0x127   :  { %s330_s20 = smov 128   ;;  %s331_s21 = smov 8  }
 0x128   :  { %187 = dma.vmem_to_hbm [thread:$0]  %s182_s12, 256, %s394_s3, [#allocation4], %s330_s20, %s330_s20, %s331_s21  }
 0x129   :  { %321 = dma.done.wait [#allocation4], 256  }
 0x12a   :  { %322 = vsyncadd [#allocation4], 4294967040 }
 0x12b   :  { %191 = vsyncpa [#allocation3], 1 }
 0x12c   :  { %192 = vsyncpa [#allocation6], 1 }
 0x12d   :  { %193 = vsyncpa [#allocation4], 1 }

</bundles_post_ra>
